<compile_context>
chip_gen: v6e
topology: v6e:2x2x1
jax: 0.10.0
libtpu: 0.0.40
codegen_flags: <defaults>
</compile_context>

<pallas_src>
import functools

import jax
import jax.numpy as jnp
from jax.experimental import pallas as pl
from jax.experimental.pallas import tpu as pltpu


def _round_up(x, m):
    return (x + m - 1) // m * m


def _choose_tile_b(B, C, itemsize):
    """Pick a batch tile (multiple of 8 sublanes) so one (TB, C) logits tile
    stays ~<=4 MiB (Pallas double-buffers it; f32 temporaries come on top)."""
    budget = 4 * 1024 * 1024
    b8 = _round_up(B, 8)
    if b8 * C * itemsize <= budget:
        return b8  # whole (padded) batch in one tile
    tb = max(8, (budget // (C * itemsize)) // 8 * 8)
    return int(min(tb, 1024, b8))
    # TODO(synk): for extreme vocab sizes (C * 8 * itemsize >> VMEM budget) a
    # chunked-C online-logsumexp variant would be required; not needed here.


def _ce_ls_kernel(x_ref, t_ref, per_ref, *, epsilon, num_classes):
    """Label-smoothed cross entropy for one (TB, C) logits tile.

    x_ref   : (TB, C) logits (f32 or bf16)
    t_ref   : (TB, 1) int32 class indices
    per_ref : (TB, 1) f32 per-sample loss
    """
    x = x_ref[...].astype(jnp.float32)                              # (TB, C)
    t = t_ref[...]                                                  # (TB, 1)

    # Numerically stable log-softmax pieces (exp/log go to the EUP slot).
    m = jnp.max(x, axis=1, keepdims=True)                           # (TB, 1)
    xm = x - m                                                      # (TB, C)
    lse = jnp.log(jnp.sum(jnp.exp(xm), axis=1, keepdims=True))      # (TB, 1)

    # Gather (x[i, t_i] - m_i) via iota-compare + masked row-sum; also the
    # m-shifted row sum. Both reuse the xm tile computed for the exp.
    cols = jax.lax.broadcasted_iota(jnp.int32, x.shape, 1)          # (TB, C)
    x_t = jnp.sum(jnp.where(cols == t, xm, 0.0), axis=1, keepdims=True)
    row_sum = jnp.sum(xm, axis=1, keepdims=True)                    # (TB, 1)

    # loss_i = m + lse - (1-eps)*x[i,t] - (eps/C)*sum_j x_ij
    #        = lse - (1-eps)*(x[i,t]-m) - (eps/C)*(sum_j x_ij - C*m)
    per_ref[...] = (lse
                    - (1.0 - epsilon) * x_t
                    - (epsilon / num_classes) * row_sum)


def cross_entropy_label_smooth(inputs, targets, *, epsilon=0.1, reduction=True):
    """inputs: (B, C) logits (f32/bf16); targets: (B,) int class ids."""
    B, C = inputs.shape
    itemsize = jnp.dtype(inputs.dtype).itemsize
    tb = _choose_tile_b(B, C, itemsize)
    b_pad = _round_up(B, tb)

    targets_2d = targets.astype(jnp.int32).reshape(B, 1)
    if b_pad != B:  # pad only when needed; padded rows are sliced off below
        inputs = jnp.pad(inputs, ((0, b_pad - B), (0, 0)))
        targets_2d = jnp.pad(targets_2d, ((0, b_pad - B), (0, 0)))

    kernel = functools.partial(
        _ce_ls_kernel, epsilon=float(epsilon), num_classes=C)

    in_tile = tb * C * itemsize          # one input tile (double-buffered)
    f32_tile = tb * C * 4                # in-kernel f32 temporaries
    vmem_limit = int(min(64 * 2**20,
                         max(16 * 2**20, 2 * in_tile + 4 * f32_tile + (2 << 20))))

    per_sample = pl.pallas_call(
        kernel,
        out_shape=jax.ShapeDtypeStruct((b_pad, 1), jnp.float32),
        grid_spec=pltpu.PrefetchScalarGridSpec(
            num_scalar_prefetch=0,
            grid=(b_pad // tb,),
            in_specs=[
                pl.BlockSpec((tb, C), lambda i: (i, 0)),
                pl.BlockSpec((tb, 1), lambda i: (i, 0)),
            ],
            out_specs=pl.BlockSpec((tb, 1), lambda i: (i, 0)),
        ),
        compiler_params=pltpu.CompilerParams(
            dimension_semantics=("parallel",),
            vmem_limit_bytes=vmem_limit,
        ),
    )(inputs, targets_2d)

    per_sample = per_sample[:B, 0]
    if reduction:
        return jnp.mean(per_sample)
    return per_sample


def _reference(inputs, targets, epsilon=0.1, reduction=True):
    C = inputs.shape[1]
    logp = jax.nn.log_softmax(inputs.astype(jnp.float32), axis=1)
    onehot = jax.nn.one_hot(targets, C, dtype=jnp.float32)
    smooth = (1.0 - epsilon) * onehot + epsilon / C
    loss = jnp.sum(-smooth * logp, axis=1)
    return jnp.mean(loss) if reduction else loss


if __name__ == "__main__":
    key = jax.random.PRNGKey(0)
    k_logits, k_tgt = jax.random.split(key)

    # Small synthetic shapes: batch=8, num_classes=16.
    B, C = 8, 16
    logits = jax.random.normal(k_logits, (B, C), dtype=jnp.float32)
    targets = jax.random.randint(k_tgt, (B,), 0, C, dtype=jnp.int32)

    # reduction=True (mean)
    loss = cross_entropy_label_smooth(logits, targets, epsilon=0.1, reduction=True)
    loss = jax.block_until_ready(loss)
    ref = _reference(logits, targets, epsilon=0.1, reduction=True)
    assert jnp.allclose(loss, ref, atol=1e-5, rtol=1e-5), (loss, ref)

    # reduction=False (per-sample)
    per = cross_entropy_label_smooth(logits, targets, epsilon=0.1, reduction=False)
    per = jax.block_until_ready(per)
    per_ref = _reference(logits, targets, epsilon=0.1, reduction=False)
    assert jnp.allclose(per, per_ref, atol=1e-5, rtol=1e-5), (per, per_ref)

    # Batch not a multiple of the sublane tile (exercises padding + slicing).
    B2 = 6
    logits2 = logits[:B2]
    targets2 = targets[:B2]
    loss2 = cross_entropy_label_smooth(logits2, targets2, epsilon=0.1, reduction=True)
    loss2 = jax.block_until_ready(loss2)
    ref2 = _reference(logits2, targets2, epsilon=0.1, reduction=True)
    assert jnp.allclose(loss2, ref2, atol=1e-5, rtol=1e-5), (loss2, ref2)

    # bf16 logits pass through uncast (kernel upcasts in-register).
    logits_bf16 = logits.astype(jnp.bfloat16)
    loss_bf = cross_entropy_label_smooth(logits_bf16, targets, epsilon=0.1, reduction=True)
    loss_bf = jax.block_until_ready(loss_bf)
    ref_bf = _reference(logits_bf16, targets, epsilon=0.1, reduction=True)
    assert jnp.allclose(loss_bf, ref_bf, atol=1e-4, rtol=1e-4), (loss_bf, ref_bf)

    print("KERNEL_OK")
</pallas_src>

<mosaic_0001>
module attributes {stable_mosaic.version = 11 : i64} {
  func.func @_ce_ls_kernel(%arg0: i32, %arg1: memref<8x16xf32, #tpu.memory_space<vmem>>, %arg2: memref<8x1xi32, #tpu.memory_space<vmem>>, %arg3: memref<8x1xf32, #tpu.memory_space<vmem>>) attributes {dimension_semantics = [#tpu.dimension_semantics<parallel>], iteration_bounds = array<i64: 1>, scalar_prefetch = 0 : i64, scratch_operands = 0 : i64, tpu.core_type = #tpu.core_type<tc>, window_params = [{transform_indices = @transform_0, window_bounds = array<i64: 8, 16>}, {transform_indices = @transform_1, window_bounds = array<i64: 8, 1>}, {transform_indices = @transform_2, window_bounds = array<i64: 8, 1>}]} {
    %c0 = arith.constant 0 : index
    %c0_0 = arith.constant 0 : index
    %0 = vector.load %arg1[%c0, %c0_0] : memref<8x16xf32, #tpu.memory_space<vmem>>, vector<8x16xf32>
    %c0_1 = arith.constant 0 : index
    %c0_2 = arith.constant 0 : index
    %1 = vector.load %arg2[%c0_1, %c0_2] : memref<8x1xi32, #tpu.memory_space<vmem>>, vector<8x1xi32>
    %cst = arith.constant dense<0xFF800000> : vector<8xf32>
    %2 = vector.multi_reduction <maximumf>, %0, %cst [1] : vector<8x16xf32> to vector<8xf32>
    %3 = vector.shape_cast %2 : vector<8xf32> to vector<8x1xf32>
    %4 = vector.broadcast %3 : vector<8x1xf32> to vector<8x16xf32>
    %5 = arith.subf %0, %4 : vector<8x16xf32>
    %6 = math.exp %5 : vector<8x16xf32>
    %cst_3 = arith.constant dense<0.000000e+00> : vector<8xf32>
    %7 = vector.multi_reduction <add>, %6, %cst_3 [1] : vector<8x16xf32> to vector<8xf32>
    %8 = vector.shape_cast %7 : vector<8xf32> to vector<8x1xf32>
    %9 = math.log %8 : vector<8x1xf32>
    %10 = tpu.iota {dimensions = array<i32: 1>} : vector<8x16xi32>
    %11 = vector.broadcast %1 : vector<8x1xi32> to vector<8x16xi32>
    %12 = arith.cmpi eq, %10, %11 : vector<8x16xi32>
    %cst_4 = arith.constant 0.000000e+00 : f32
    %13 = vector.broadcast %cst_4 : f32 to vector<8x16xf32>
    %14 = arith.select %12, %5, %13 : vector<8x16xi1>, vector<8x16xf32>
    %cst_5 = arith.constant dense<0.000000e+00> : vector<8xf32>
    %15 = vector.multi_reduction <add>, %14, %cst_5 [1] : vector<8x16xf32> to vector<8xf32>
    %16 = vector.shape_cast %15 : vector<8xf32> to vector<8x1xf32>
    %cst_6 = arith.constant dense<0.000000e+00> : vector<8xf32>
    %17 = vector.multi_reduction <add>, %5, %cst_6 [1] : vector<8x16xf32> to vector<8xf32>
    %18 = vector.shape_cast %17 : vector<8xf32> to vector<8x1xf32>
    %cst_7 = arith.constant 0.899999976 : f32
    %19 = vector.broadcast %cst_7 : f32 to vector<8x1xf32>
    %20 = arith.mulf %19, %16 : vector<8x1xf32>
    %21 = arith.subf %9, %20 : vector<8x1xf32>
    %cst_8 = arith.constant 6.250000e-03 : f32
    %22 = vector.broadcast %cst_8 : f32 to vector<8x1xf32>
    %23 = arith.mulf %22, %18 : vector<8x1xf32>
    %24 = arith.subf %21, %23 : vector<8x1xf32>
    %c0_9 = arith.constant 0 : index
    %c0_10 = arith.constant 0 : index
    %25 = vector.load %arg3[%c0_9, %c0_10] : memref<8x1xf32, #tpu.memory_space<vmem>>, vector<8x1xf32>
    tpu.vector_store %arg3[%c0_9, %c0_10], %24 {strides = array<i32>} : memref<8x1xf32, #tpu.memory_space<vmem>>, vector<8x1xf32>,
    return
  }
  func.func @transform_0(%arg0: i32) -> (i32, i32) {
    %c0_i32 = arith.constant 0 : i32
    %c0_i32_0 = arith.constant 0 : i32
    return %arg0, %c0_i32 : i32, i32
  }
  func.func @transform_1(%arg0: i32) -> (i32, i32) {
    %c0_i32 = arith.constant 0 : i32
    %c0_i32_0 = arith.constant 0 : i32
    return %arg0, %c0_i32 : i32, i32
  }
  func.func @transform_2(%arg0: i32) -> (i32, i32) {
    %c0_i32 = arith.constant 0 : i32
    %c0_i32_0 = arith.constant 0 : i32
    return %arg0, %c0_i32 : i32, i32
  }
}

</mosaic_0001>

<bundles_post_ra>
// kernel: tpu_custom_call.1
= control target key start
LH: loop header
LB: loop body
LE: loop exit
PB: predicated region body
PF: predicated region fallthrough
CT: control target
= control target key end

     0   :  { %vm13_vm0 = vcmask 130048   ;;  %v54_v1 = vmov 0   ;;  %v25_v7 = vlaneseq  ;;  %vm42_vm2 = vcmask 7168   ;;  %s83_s0 = inlined_call_operand.vmem [shape: f32[8,16], index: 0, kind: input, shape index: {}]   ;;  %s84_s1 = inlined_call_operand.vmem [shape: s32[8,1], index: 1, kind: input, shape index: {}]   ;;  %s85_s2 = inlined_call_operand.vmem [shape: f32[8,1], index: 2, kind: output, shape index: {}]  }
   0x1   :  { %v11_v0 = vld [vmem:[%s83_s0] sm:$0xff]  ;;  %49 = vset.pattern.permute.xlu0 %v54_v1 }
   0x2   :  { %v14_v2 = vsel %vm13_vm0, %v11_v0, -inf  ;;  %v12_v3 = vld [vmem:[%s84_s1] sm:$0xff]  ;;  %v26_v8 = vand.u32 127, %v25_v7 }
   0x3   :  { %15 = vmax.xlane.f32.xlu0 %v14_v2 }
  0x19   :  { %28 = vperm.xlu0 %49, %v12_v3  }
  0x8c   :  { %v16_v4 = vpop.xlane.xlu0 %15 }
  0x8d   :  { %v17_v5 = vsub.f32 %v11_v0, %v16_v4 }
  0x8f   :  { %v18_v6 = vmul.f32 1.442695, %v17_v5  ;;  %v35_v14 = vsel %vm13_vm0, %v17_v5, 0.0 }
  0x91   :  { %50 = vpow2.f32 %v18_v6 }
  0x94   :  { %v29_v9 = vpop.permute.xlu0 %28 }
  0x95   :  { %vm30_vm1 = vcmp.eq.s32.totalorder %v26_v8, %v29_v9 }
  0x96   :  { %v31_v12 = vsel %vm30_vm1, %v17_v5, 0.0 }
  0x97   :  { %v32_v13 = vsel %vm13_vm0, %v31_v12, 0.0 }
  0x9e   :  { %v51_v10 = vpop.eup %50 }
  0x9f   :  { %v20_v11 = vsel %vm13_vm0, %v51_v10, 0.0 }
  0xa0   :  { %21 = vadd.xlane.f32.xlu1 %v20_v11 }
  0xa4   :  { %33 = vadd.xlane.f32.xlu1 %v32_v13 }
  0xa8   :  { %36 = vadd.xlane.f32.xlu1 %v35_v14 }
 0x129   :  { %v22_v15 = vpop.xlane.xlu1 %21 }
 0x12a   :  { %52 = vlog2.f32 %v22_v15 }
 0x12d   :  { %v34_v16 = vpop.xlane.xlu1 %33 }
 0x12e   :  { %v38_v20 = vmul.f32 0.9, %v34_v16 }
 0x131   :  { %v37_v18 = vpop.xlane.xlu1 %36 }
 0x132   :  { %v40_v22 = vmul.f32 0.00625, %v37_v18 }
 0x137   :  { %v53_v17 = vpop.eup %52 }
 0x138   :  { %v24_v19 = vmul.f32 0.6931472, %v53_v17 }
 0x13a   :  { %v39_v21 = vsub.f32 %v24_v19, %v38_v20 }
 0x13c   :  { %v41_v23 = vsub.f32 %v39_v21, %v40_v22 }
 0x13e   :  { %43 = vst.msk [vmem:[%s85_s2] sm:$0xff] %vm42_vm2, %v41_v23 }

</bundles_post_ra>
